<compile_context>
chip_gen: v7x
topology: tpu7x:2x2x1
jax: 0.10.0
libtpu: 0.0.40
codegen_flags: <defaults>
</compile_context>

<pallas_src>
import functools

import jax
import jax.numpy as jnp
from jax.experimental import pallas as pl
from jax.experimental.pallas import tpu as pltpu

N_CLASSES_A = 21
N_CLASSES_B = 40
C_PAD = 128  # lane-dense padded fused class dim: 21 + 40 = 61 <= 128


# --------------------------------------------------------------------------- #
# Kernel                                                                      #
# --------------------------------------------------------------------------- #
def _fused_heads_kernel(x_ref, w_ref, b_ref, o_ref):
    """sigmoid(x @ W_fused + b_fused) for one batch tile (both heads at once)."""
    x = x_ref[...]                                                   # [tb, D]
    z = jnp.dot(x, w_ref[...], preferred_element_type=jnp.float32)   # [tb, C_PAD]
    z = z + b_ref[...]                                               # broadcast bias
    o_ref[...] = jax.nn.sigmoid(z).astype(o_ref.dtype)


# --------------------------------------------------------------------------- #
# Tile-size heuristic (generation aware)                                      #
# --------------------------------------------------------------------------- #
def _round_up(x, m):
    return ((x + m - 1) // m) * m


def _num_tensorcores():
    """Best-effort detection of TensorCores per chip (v7x has 2)."""
    try:
        d = jax.devices()[0]
        kind = (getattr(d, "device_kind", "") or "").lower()
        if "v7" in kind:
            return 2
    except Exception:
        pass
    return 1


def _choose_tb(B, D, n_cores, dtype_bytes=4):
    def vmem_bytes(tb):
        # x tile (double-buffered) + out tile (double-buffered)
        # + resident fused weight/bias (single-buffered).
        return (2 * tb * D + 2 * tb * C_PAD + D * C_PAD + C_PAD) * dtype_bytes

    # Conservative budget: stays under v5e's 16 MiB scoped-VMEM default.
    budget = 12 * 1024 * 1024

    if n_cores <= 1:
        # Single TensorCore (v5e/v6e): grid steps are a serial loop -> pure
        # overhead.  Take one block if it fits, else the largest tile that does.
        if vmem_bytes(B) <= budget:
            return B
        tb = 2048
        while tb > 8 and vmem_bytes(tb) > budget:
            tb //= 2
        return max(tb, 8)

    # v7x: 2 TensorCores share the "parallel" batch axis.  Make the grid length
    # a multiple of n_cores with evenly sized, large tiles (cap 1024).
    tb_cap = 1024
    while tb_cap > 8 and vmem_bytes(tb_cap) > budget:
        tb_cap //= 2
    steps = max(pl.cdiv(B, tb_cap), n_cores)
    steps = _round_up(steps, n_cores)
    tb = _round_up(pl.cdiv(B, steps), 8)
    while tb > 8 and vmem_bytes(tb) > budget:
        tb //= 2
    if tb >= B:
        return B          # single (full-extent) block; no (8,128) constraint
    return max(tb, 8)


# --------------------------------------------------------------------------- #
# Jitted forward (pallas_call + head split fused in one dispatch)             #
# --------------------------------------------------------------------------- #
@functools.partial(jax.jit, static_argnames=("tb",))
def _forward_jit(x, w_fused, b_fused, tb):
    B, D = x.shape
    grid = (pl.cdiv(B, tb),)

    cost = pl.CostEstimate(
        flops=2 * B * D * C_PAD,
        transcendentals=B * C_PAD,
        bytes_accessed=4 * (B * D + D * C_PAD + C_PAD + B * C_PAD),
    )

    out = pl.pallas_call(
        _fused_heads_kernel,
        out_shape=jax.ShapeDtypeStruct((B, C_PAD), x.dtype),
        grid_spec=pltpu.PrefetchScalarGridSpec(
            num_scalar_prefetch=0,
            grid=grid,
            in_specs=[
                # x tile: batch rows on sublanes, feature dim D on lanes.
                pl.BlockSpec((tb, D), lambda i: (i, 0)),
                # Fused weight / bias: resident (constant index_map), single-buffered.
                pl.BlockSpec((D, C_PAD), lambda i: (0, 0),
                             pipeline_mode=pl.Buffered(1)),
                pl.BlockSpec((1, C_PAD), lambda i: (0, 0),
                             pipeline_mode=pl.Buffered(1)),
            ],
            out_specs=pl.BlockSpec((tb, C_PAD), lambda i: (i, 0)),
        ),
        compiler_params=pltpu.CompilerParams(
            dimension_semantics=("parallel",)),
        cost_estimate=cost,
    )(x, w_fused, b_fused)

    # Head split stays inside the jit: no extra HBM round-trips / dispatches.
    out_a = out[:, :N_CLASSES_A]
    out_b = out[:, N_CLASSES_A:N_CLASSES_A + N_CLASSES_B]
    return out_a, out_b


def final_prediction_forward(x, w_fused, b_fused, *, tb=None):
    """x: [B, D] f32.  w_fused: [D, 128] (cols 0..20 = head A, 21..60 = head B),
    b_fused: [1, 128].  Returns (out_a [B, 21], out_b [B, 40]) matching the
    PyTorch module in eval mode (dropout = identity)."""
    B, D = x.shape
    if tb is None:
        tb = _choose_tb(B, D, _num_tensorcores())
    tb = min(tb, B)
    # TODO(synk): for B <~ 256 this head could be fused as an epilogue of the
    # preceding kernel (or left to XLA) to avoid the fixed pallas_call latency.
    return _forward_jit(x, w_fused, b_fused, tb)


# --------------------------------------------------------------------------- #
# Parameter init (mimics nn.Linear default init) + fused packing              #
# --------------------------------------------------------------------------- #
def init_params(key, in_dim):
    """Returns fused padded params (for the kernel) and raw per-head params
    (for the pure-JAX reference).  Padding columns are zero; their outputs
    (sigmoid(0)=0.5) are sliced away and never affect results."""
    bound = 1.0 / jnp.sqrt(in_dim)
    kwa, kba, kwb, kbb = jax.random.split(key, 4)

    wa = jax.random.uniform(kwa, (in_dim, N_CLASSES_A), jnp.float32, -bound, bound)
    ba = jax.random.uniform(kba, (N_CLASSES_A,), jnp.float32, -bound, bound)
    wb = jax.random.uniform(kwb, (in_dim, N_CLASSES_B), jnp.float32, -bound, bound)
    bb = jax.random.uniform(kbb, (N_CLASSES_B,), jnp.float32, -bound, bound)

    w_fused = jnp.zeros((in_dim, C_PAD), jnp.float32)
    w_fused = w_fused.at[:, :N_CLASSES_A].set(wa)
    w_fused = w_fused.at[:, N_CLASSES_A:N_CLASSES_A + N_CLASSES_B].set(wb)

    b_fused = jnp.zeros((1, C_PAD), jnp.float32)
    b_fused = b_fused.at[0, :N_CLASSES_A].set(ba)
    b_fused = b_fused.at[0, N_CLASSES_A:N_CLASSES_A + N_CLASSES_B].set(bb)

    return (w_fused, b_fused), (wa, ba, wb, bb)


# --------------------------------------------------------------------------- #
# Demo / correctness check                                                    #
# --------------------------------------------------------------------------- #
if __name__ == "__main__":
    key = jax.random.PRNGKey(0)
    D = 256  # small stand-in for the default in_dim=1024

    kx, kx2, kp = jax.random.split(key, 3)
    (w_fused, b_fused), (wa, ba, wb, bb) = init_params(kp, D)

    def ref(x):
        return jax.nn.sigmoid(x @ wa + ba), jax.nn.sigmoid(x @ wb + bb)

    # 1) Small batch through the auto tile heuristic (single block on 1-TC chips).
    B1 = 16
    x1 = jax.random.normal(kx, (B1, D), jnp.float32)
    out_a, out_b = jax.block_until_ready(final_prediction_forward(x1, w_fused, b_fused))
    ref_a, ref_b = ref(x1)
    assert out_a.shape == (B1, N_CLASSES_A) and out_b.shape == (B1, N_CLASSES_B)
    assert jnp.allclose(out_a, ref_a, atol=1e-5, rtol=1e-5)
    assert jnp.allclose(out_b, ref_b, atol=1e-5, rtol=1e-5)

    # 2) Multi-tile path with a remainder tile (B=272, tb=128 -> grid of 3,
    #    last block partial) to exercise the pipelined / masked-writeback case.
    B2 = 272
    x2 = jax.random.normal(kx2, (B2, D), jnp.float32)
    out_a2, out_b2 = jax.block_until_ready(
        final_prediction_forward(x2, w_fused, b_fused, tb=128))
    ref_a2, ref_b2 = ref(x2)
    assert out_a2.shape == (B2, N_CLASSES_A) and out_b2.shape == (B2, N_CLASSES_B)
    assert jnp.allclose(out_a2, ref_a2, atol=1e-5, rtol=1e-5)
    assert jnp.allclose(out_b2, ref_b2, atol=1e-5, rtol=1e-5)

    print("KERNEL_OK")
</pallas_src>

<mosaic_0001>
module attributes {stable_mosaic.version = 11 : i64} {
  func.func @_fused_heads_kernel(%arg0: i32, %arg1: memref<16x256xf32, #tpu.memory_space<vmem>>, %arg2: memref<256x128xf32, #tpu.memory_space<vmem>>, %arg3: memref<1x128xf32, #tpu.memory_space<vmem>>, %arg4: memref<16x128xf32, #tpu.memory_space<vmem>>) attributes {dimension_semantics = [#tpu.dimension_semantics<parallel>], iteration_bounds = array<i64: 1>, scalar_prefetch = 0 : i64, scratch_operands = 0 : i64, tpu.core_type = #tpu.core_type<tc>, window_params = [{transform_indices = @transform_0, window_bounds = array<i64: 16, 256>}, {pipeline_mode = #tpu.pipeline_mode<synchronous>, transform_indices = @transform_1, window_bounds = array<i64: 256, 128>}, {pipeline_mode = #tpu.pipeline_mode<synchronous>, transform_indices = @transform_2, window_bounds = array<i64: 1, 128>}, {transform_indices = @transform_3, window_bounds = array<i64: 16, 128>}]} {
    %c0 = arith.constant 0 : index
    %c0_0 = arith.constant 0 : index
    %0 = vector.load %arg1[%c0, %c0_0] : memref<16x256xf32, #tpu.memory_space<vmem>>, vector<16x256xf32>
    %c0_1 = arith.constant 0 : index
    %c0_2 = arith.constant 0 : index
    %1 = vector.load %arg2[%c0_1, %c0_2] : memref<256x128xf32, #tpu.memory_space<vmem>>, vector<256x128xf32>
    %cst = arith.constant dense<0.000000e+00> : vector<16x128xf32>
    %2 = tpu.matmul %0, %1, %cst {dimension_numbers = #tpu.dot_dimension_numbers<[1], [0], [0], [1], [0, 0, 1, 1], [], []>} : vector<16x256xf32>, vector<256x128xf32>, vector<16x128xf32> -> vector<16x128xf32>
    %c0_3 = arith.constant 0 : index
    %c0_4 = arith.constant 0 : index
    %3 = vector.load %arg3[%c0_3, %c0_4] : memref<1x128xf32, #tpu.memory_space<vmem>>, vector<1x128xf32>
    %4 = vector.broadcast %3 : vector<1x128xf32> to vector<16x128xf32>
    %5 = arith.addf %2, %4 : vector<16x128xf32>
    %6 = arith.negf %5 : vector<16x128xf32>
    %7 = math.exp %6 : vector<16x128xf32>
    %cst_5 = arith.constant 1.000000e+00 : f32
    %8 = vector.broadcast %cst_5 : f32 to vector<16x128xf32>
    %9 = arith.addf %8, %7 : vector<16x128xf32>
    %10 = arith.divf %8, %9 : vector<16x128xf32>
    %c0_6 = arith.constant 0 : index
    %c0_7 = arith.constant 0 : index
    %11 = vector.load %arg4[%c0_6, %c0_7] : memref<16x128xf32, #tpu.memory_space<vmem>>, vector<16x128xf32>
    tpu.vector_store %arg4[%c0_6, %c0_7], %10 {strides = array<i32>} : memref<16x128xf32, #tpu.memory_space<vmem>>, vector<16x128xf32>,
    return
  }
  func.func @transform_0(%arg0: i32) -> (i32, i32) {
    %c0_i32 = arith.constant 0 : i32
    %c0_i32_0 = arith.constant 0 : i32
    return %arg0, %c0_i32 : i32, i32
  }
  func.func @transform_1(%arg0: i32) -> (i32, i32) {
    %c0_i32 = arith.constant 0 : i32
    %c0_i32_0 = arith.constant 0 : i32
    %c0_i32_1 = arith.constant 0 : i32
    return %c0_i32, %c0_i32_0 : i32, i32
  }
  func.func @transform_2(%arg0: i32) -> (i32, i32) {
    %c0_i32 = arith.constant 0 : i32
    %c0_i32_0 = arith.constant 0 : i32
    %c0_i32_1 = arith.constant 0 : i32
    return %c0_i32, %c0_i32_0 : i32, i32
  }
  func.func @transform_3(%arg0: i32) -> (i32, i32) {
    %c0_i32 = arith.constant 0 : i32
    %c0_i32_0 = arith.constant 0 : i32
    return %arg0, %c0_i32 : i32, i32
  }
}

</mosaic_0001>

<bundles_post_ra>
// kernel: _forward_jit.1
= control target key start
LH: loop header
LB: loop body
LE: loop exit
PB: predicated region body
PF: predicated region fallthrough
CT: control target
= control target key end

     0   :  { %8 = vsyncpa [#allocation3], 0  ;;  %s390_s0 = inlined_call_operand.hbm [shape: f32[16,256], index: 0, kind: input, shape index: {}]   ;;  %s391_s1 = inlined_call_operand.hbm [shape: f32[256,128], index: 1, kind: input, shape index: {}]   ;;  %s392_s2 = inlined_call_operand.vmem [shape: f32[1,128], index: 2, kind: input, shape index: {}]   ;;  %s393_s3 = inlined_call_operand.vmem [shape: f32[16,128], index: 3, kind: output, shape index: {}]  }
   0x1   :  { %9 = vsyncpa [#allocation5], 0  ;;  %s331_s12 = smov [#allocation2]   ;;  %s283_s16 = scalar_lea.hbm %s390_s0, 512 }
   0x2   :  { %s15_s13 = sshll.u32 %s331_s12, 4  ;;  %p284_p0 = scmp.ne.s32.totalorder %s390_s0, %s283_s16  ;;  %s16_s13 = int_to_ptr.vmem [resolvable:$true] %s15_s13 }
   0x3   :  { %p287_p1 = scmp.lt.u32.totalorder %s283_s16, %s390_s0 }
   0x5   :  { %p289_p2 = pnand %p287_p1, %p284_p0 }
   0x7   :  { %292 = shalt.err (!%p289_p2)
}
   0x8   :  { %s293_s21 = scalar_lea.vmem %s16_s13, 512  ;;  %p298_p4 = scmp.lt.s32.totalorder %s16_s13, %s16_s13 }
   0x9   :  { %p294_p3 = scmp.ne.s32.totalorder %s16_s13, %s293_s21  ;;  %p299_p5 = scmp.lt.s32.totalorder %s293_s21, %s293_s21 }
   0xb   :  { %p300_p6 = por %p299_p5, %p298_p4 }
   0xd   :  { %p301_p7 = pnand %p300_p6, %p294_p3 }
   0xf   :  { %304 = shalt.err (!%p301_p7)
}
  0x10   :  { %s332_s22 = smov 256   ;;  %s333_s23 = smov 16  }
  0x11   :  { %21 = dma.hbm_to_vmem [thread:$0]  %s390_s0, 512, %s16_s13, [#allocation3], %s332_s22, %s332_s22, %s333_s23  }
  0x12   :  { %s334_s26 = smov [#allocation4]   ;;  %s305_s30 = scalar_lea.hbm %s391_s1, 4096 }
  0x13   :  { %s27_s27 = sshll.u32 %s334_s26, 4  ;;  %p306_p8 = scmp.ne.s32.totalorder %s391_s1, %s305_s30  ;;  %s28_s27 = int_to_ptr.vmem [resolvable:$true] %s27_s27 }
  0x14   :  { %p309_p9 = scmp.lt.u32.totalorder %s305_s30, %s391_s1 }
  0x16   :  { %p311_p10 = pnand %p309_p9, %p306_p8 }
  0x18   :  { %314 = shalt.err (!%p311_p10)
}
  0x19   :  { %s315_s8 = scalar_lea.vmem %s28_s27, 4096  ;;  %p320_p12 = scmp.lt.s32.totalorder %s28_s27, %s28_s27 }
  0x1a   :  { %p316_p11 = scmp.ne.s32.totalorder %s28_s27, %s315_s8  ;;  %p321_p13 = scmp.lt.s32.totalorder %s315_s8, %s315_s8 }
  0x1c   :  { %p322_p0 = por %p321_p13, %p320_p12 }
  0x1e   :  { %p323_p1 = pnand %p322_p0, %p316_p11 }
  0x20   :  { %326 = shalt.err (!%p323_p1)
}
  0x21   :  { %s335_s0 = smov 128   ;;  %s336_s9 = smov 8  }
  0x22   :  { %33 = dma.hbm_to_vmem [thread:$0]  %s391_s1, 4096, %s28_s27, [#allocation5], %s335_s0, %s335_s0, %s336_s9  }
  0x23   :  { %327 = dma.done.wait [#allocation3], 512  }
  0x24   :  { %328 = vsyncadd [#allocation3], 4294966784 }
  0x25   :  { %329 = dma.done.wait [#allocation5], 4096  }
  0x26   :  { %330 = vsyncadd [#allocation5], 4294963200  ;;  %v62_v0 = vld [vmem:[#allocation4 + $0x80] sm:$0xff]  ;;  %v63_v1 = vld [vmem:[#allocation4 + $0x88] sm:$0xff] }
  0x27   :  { %v46_v2 = vld [vmem:[#allocation4] sm:$0xff]  ;;  %v221_v3 = vpack.c.bf16 %v63_v1, %v62_v0  ;;  %v47_v4 = vld [vmem:[#allocation4 + $0x8] sm:$0xff]  ;;  %v64_v5 = vld [vmem:[#allocation4 + $0x90] sm:$0xff] }
  0x28   :  { %v65_v6 = vld [vmem:[#allocation4 + $0x98] sm:$0xff]  ;;  %v223_v7 = vpack.c.bf16 %v47_v4, %v46_v2  ;;  %v48_v9 = vld [vmem:[#allocation4 + $0x10] sm:$0xff]  ;;  %v66_v11 = vld [vmem:[#allocation4 + $0xa0] sm:$0xff] }
  0x29   :  { %v225_v8 = vpack.c.bf16 %v65_v6, %v64_v5  ;;  %v49_v10 = vld [vmem:[#allocation4 + $0x18] sm:$0xff]  ;;  %222 = vmatprep.subr.bf16.mxu0 %v221_v3  ;;  %253 = vmatprep.subr.bf16.mxu1 %v221_v3  ;;  %v67_v12 = vld [vmem:[#allocation4 + $0xa8] sm:$0xff]  ;;  %v50_v15 = vld [vmem:[#allocation4 + $0x20] sm:$0xff] }
  0x2a   :  { %224 = vmatpush3.bf16.msra.mxu0 %v223_v7  ;;  %261 = vmatpush3.bf16.msra.mxu1 %v223_v7  ;;  %v227_v13 = vpack.c.bf16 %v49_v10, %v48_v9  ;;  %v229_v14 = vpack.c.bf16 %v67_v12, %v66_v11  ;;  %v51_v16 = vld [vmem:[#allocation4 + $0x28] sm:$0xff]  ;;  %v68_v17 = vld [vmem:[#allocation4 + $0xb0] sm:$0xff]  ;;  %v69_v18 = vld [vmem:[#allocation4 + $0xb8] sm:$0xff] }
  0x2b   :  { %226 = vmatprep.subr.bf16.mxu0 %v225_v8  ;;  %254 = vmatprep.subr.bf16.mxu1 %v225_v8  ;;  %v231_v19 = vpack.c.bf16 %v51_v16, %v50_v15  ;;  %v233_v20 = vpack.c.bf16 %v69_v18, %v68_v17  ;;  %v52_v21 = vld [vmem:[#allocation4 + $0x30] sm:$0xff]  ;;  %v53_v22 = vld [vmem:[#allocation4 + $0x38] sm:$0xff]  ;;  %v70_v23 = vld [vmem:[#allocation4 + $0xc0] sm:$0xff] }
  0x2c   :  { %v71_v24 = vld [vmem:[#allocation4 + $0xc8] sm:$0xff]  ;;  %v45_v26 = vld [vmem:[#allocation2 + $0x18] sm:$0xff]  ;;  %v235_v27 = vpack.c.bf16 %v53_v22, %v52_v21  ;;  %v54_v29 = vld [vmem:[#allocation4 + $0x40] sm:$0xff] }
  0x2d   :  { %v43_v25 = vld [vmem:[#allocation2 + $0x8] sm:$0xff]  ;;  %v237_v28 = vpack.c.bf16 %v71_v24, %v70_v23  ;;  %v72_v31 = vld [vmem:[#allocation4 + $0xd0] sm:$0xff]  ;;  %v73_v32 = vld [vmem:[#allocation4 + $0xd8] sm:$0xff]  ;;  %154 = vmatprep.mubr.f32.mxu1 %v45_v26 }
  0x2e   :  { %228 = vmatpush3.bf16.msra.mxu0 %v227_v13  ;;  %262 = vmatpush3.bf16.msra.mxu1 %v227_v13  ;;  %v55_v30 = vld [vmem:[#allocation4 + $0x48] sm:$0xff]  ;;  %v241_v34 = vpack.c.bf16 %v73_v32, %v72_v31  ;;  %v56_v35 = vld [vmem:[#allocation4 + $0x50] sm:$0xff]  ;;  %v57_v36 = vld [vmem:[#allocation4 + $0x58] sm:$0xff] }
  0x2f   :  { %230 = vmatprep.subr.bf16.mxu0 %v229_v14  ;;  %255 = vmatprep.subr.bf16.mxu1 %v229_v14  ;;  %v239_v33 = vpack.c.bf16 %v55_v30, %v54_v29  ;;  %v74_v37 = vld [vmem:[#allocation4 + $0xe0] sm:$0xff]  ;;  %v75_v38 = vld [vmem:[#allocation4 + $0xe8] sm:$0xff]  ;;  %v243_v39 = vpack.c.bf16 %v57_v36, %v56_v35  ;;  %v76_v43 = vld [vmem:[#allocation4 + $0xf0] sm:$0xff] }
  0x30   :  { %149 = vmatprep.mubr.f32.mxu0 %v43_v25  ;;  %v245_v40 = vpack.c.bf16 %v75_v38, %v74_v37  ;;  %v58_v41 = vld [vmem:[#allocation4 + $0x60] sm:$0xff]  ;;  %v59_v42 = vld [vmem:[#allocation4 + $0x68] sm:$0xff]  ;;  %v77_v44 = vld [vmem:[#allocation4 + $0xf8] sm:$0xff] }
  0x31   :  { %v247_v45 = vpack.c.bf16 %v59_v42, %v58_v41  ;;  %v249_v46 = vpack.c.bf16 %v77_v44, %v76_v43  ;;  %v60_v47 = vld [vmem:[#allocation4 + $0x70] sm:$0xff]  ;;  %v61_v48 = vld [vmem:[#allocation4 + $0x78] sm:$0xff]  ;;  %v42_v50 = vld [vmem:[#allocation2] sm:$0xff] }
  0x32   :  { %232 = vmatpush3.bf16.msra.mxu0 %v231_v19  ;;  %263 = vmatpush3.bf16.msra.mxu1 %v231_v19  ;;  %v251_v49 = vpack.c.bf16 %v61_v48, %v60_v47  ;;  %v44_v51 = vld [vmem:[#allocation2 + $0x10] sm:$0xff] }
  0x33   :  { %234 = vmatprep.subr.bf16.mxu0 %v233_v20  ;;  %256 = vmatprep.subr.bf16.mxu1 %v233_v20  ;;  %v180_v54 = vld [vmem:[%s392_s2] ss:$0 sm:$0xff] }
  0x36   :  { %236 = vmatpush3.bf16.msra.mxu0 %v235_v27  ;;  %264 = vmatpush3.bf16.msra.mxu1 %v235_v27 }
  0x37   :  { %238 = vmatprep.subr.bf16.mxu0 %v237_v28  ;;  %257 = vmatprep.subr.bf16.mxu1 %v237_v28 }
  0x3a   :  { %240 = vmatpush3.bf16.msra.mxu0 %v239_v33  ;;  %265 = vmatpush3.bf16.msra.mxu1 %v239_v33 }
  0x3b   :  { %242 = vmatprep.subr.bf16.mxu0 %v241_v34  ;;  %258 = vmatprep.subr.bf16.mxu1 %v241_v34 }
  0x3e   :  { %244 = vmatpush3.bf16.msra.mxu0 %v243_v39  ;;  %266 = vmatpush3.bf16.msra.mxu1 %v243_v39 }
  0x3f   :  { %246 = vmatprep.subr.bf16.mxu0 %v245_v40  ;;  %259 = vmatprep.subr.bf16.mxu1 %v245_v40 }
  0x42   :  { %248 = vmatpush3.bf16.msra.mxu0 %v247_v45  ;;  %267 = vmatpush3.bf16.msra.mxu1 %v247_v45 }
  0x43   :  { %250 = vmatprep.subr.bf16.mxu0 %v249_v46  ;;  %260 = vmatprep.subr.bf16.mxu1 %v249_v46 }
  0x46   :  { %252 = vmatpush3.bf16.msra.mxu0 %v251_v49  ;;  %268 = vmatpush3.bf16.msra.mxu1 %v251_v49 }
  0x49   :  { %150 = vmatmul.mubr.f32.vlgmr.msra.gmra.mrb[0].mxu0 %v42_v50  ;;  %155 = vmatmul.mubr.f32.vlgmr.msra.gmra.mrb[0].mxu1 %v44_v51 }
 0x11c   :  { %v215_v52 = vpop.f32.mrb[0].mxu0  ;;  %v218_v53 = vpop.f32.mrb[0].mxu1 }
 0x11d   :  { %v216_v55 = vpop.f32.mrb[1].mxu0  ;;  %v219_v56 = vpop.f32.mrb[1].mxu1 }
 0x11e   :  { %v217_v57 = vadd.f32 %v216_v55, %v215_v52  ;;  %v220_v58 = vadd.f32 %v219_v56, %v218_v53 }
 0x120   :  { %v152_v59 = vadd.f32 %v217_v57, %v180_v54  ;;  %v157_v60 = vadd.f32 %v220_v58, %v180_v54 }
 0x122   :  { %v181_v61 = vmul.f32 -1.442695, %v152_v59  ;;  %v182_v62 = vmul.f32 -1.442695, %v157_v60 }
 0x124   :  { %275 = vpow2.f32 %v181_v61 }
 0x125   :  { %277 = vpow2.f32 %v182_v62 }
 0x12e   :  { %v276_v63 = vpop.eup %275 }
 0x12f   :  { %v278_v0 = vpop.eup %277  ;;  %v166_v1 = vadd.f32 1.0, %v276_v63 }
 0x130   :  { %v167_v2 = vadd.f32 1.0, %v278_v0 }
 0x131   :  { %279 = vrcp.f32 %v166_v1 }
 0x132   :  { %281 = vrcp.f32 %v167_v2 }
 0x13b   :  { %v280_v3 = vpop.eup %279 }
 0x13c   :  { %v282_v4 = vpop.eup %281  ;;  %172 = vst [vmem:[%s393_s3] sm:$0xff] %v280_v3 }
 0x13d   :  { %173 = vst [vmem:[%s393_s3 + $0x8] sm:$0xff] %v282_v4 }
 0x13e   :  { %178 = vsyncpa [#allocation3], 1 }
 0x13f   :  { %179 = vsyncpa [#allocation5], 1 }

</bundles_post_ra>
